<compile_context>
chip_gen: v6e
topology: v6e:2x2x1
jax: 0.10.0
libtpu: 0.0.40
codegen_flags: <defaults>
</compile_context>

<pallas_src>
import functools

import jax
import jax.numpy as jnp
from jax.experimental import pallas as pl
from jax.experimental.pallas import tpu as pltpu


# -----------------------------------------------------------------------------
# Kernel
# -----------------------------------------------------------------------------
def _add_pe_dropout_kernel(x_ref, pe_ref, keep_ref, o_ref, *, scale):
    """out = (x + pe) * keep * scale   (inverted dropout).

    x_ref    : VMEM (TB, N)  -- row-tile of the flattened (B, S*E) input
    pe_ref   : VMEM (1,  N)  -- flattened positional-encoding table (broadcast)
    keep_ref : VMEM (TB, N)  -- uint8 keep mask (1 = keep, 0 = drop)
    o_ref    : VMEM (TB, N)  -- output tile
    """
    x = x_ref[...]
    keep = keep_ref[...].astype(x.dtype)
    o_ref[...] = ((x + pe_ref[...]) * keep * scale).astype(o_ref.dtype)


# -----------------------------------------------------------------------------
# PE table (matches the PyTorch __init__ formula)
# -----------------------------------------------------------------------------
def make_positional_encoding_table(embed: int, pad_size: int) -> jnp.ndarray:
    pos = jnp.arange(pad_size, dtype=jnp.float32)[:, None]          # (S, 1)
    i = jnp.arange(embed)                                           # (E,)
    exponent = (i // 2 * 2).astype(jnp.float32) / float(embed)
    div = jnp.power(jnp.float32(10000.0), exponent)                 # (E,)
    angle = pos / div                                               # (S, E)
    pe = jnp.where(i % 2 == 0, jnp.sin(angle), jnp.cos(angle))
    return pe.astype(jnp.float32)


# -----------------------------------------------------------------------------
# Wrapper
# -----------------------------------------------------------------------------
def _choose_row_tile(batch: int, row_bytes: int, budget_bytes: int) -> int:
    """Largest row-tile whose double-buffered working set fits the budget."""
    max_rows = max(1, budget_bytes // (2 * row_bytes))   # x2 for pipeline bufs
    if batch <= max_rows or batch <= 32:
        return batch                                      # full dim -> always legal
    return max(32, (max_rows // 32) * 32)                 # multiple of 32 (uint8 tiling)


def positional_encoding_forward(x, pe, *, dropout_p=0.1, training=True,
                                rng_key=None):
    """x: (B, S, E), pe: (S, E) -> (B, S, E)."""
    B, S, E = x.shape
    assert pe.shape == (S, E)
    p = float(dropout_p)

    pe_x = pe.astype(x.dtype)

    # Eval mode / p == 0: identity dropout -- plain broadcast-add is already
    # a single fused, bandwidth-limited XLA op; a Pallas call adds nothing.
    if not training or p <= 0.0:
        return x + pe_x[None]
    if p >= 1.0:
        return jnp.zeros_like(x)
    if rng_key is None:
        rng_key = jax.random.PRNGKey(0)

    N = S * E
    itemsize = jnp.dtype(x.dtype).itemsize

    # Lane-dense 2-D views (embed & seq collapsed onto the 128-lane axis).
    x2 = x.reshape(B, N)
    pe2 = pe_x.reshape(1, N)

    # Dropout keep-mask: generated wrapper-side so results are deterministic
    # and independent of the tiling choice. uint8 => only 1 B/elem extra HBM.
    keep = jax.random.bernoulli(rng_key, 1.0 - p, (B, N)).astype(jnp.uint8)

    # Tile sizing: x + out (x.dtype) + mask (uint8) per row, double-buffered.
    # Keep the working set <= ~20 MiB so it fits scoped VMEM on v5e/v6e/v7x
    # once the limit below is applied (v7x has only 64 MiB physical VMEM).
    row_bytes = N * (2 * itemsize + 1)
    tb = _choose_row_tile(B, row_bytes, budget_bytes=20 * 1024 * 1024)
    grid = (pl.cdiv(B, tb),)

    working_set = 2 * tb * row_bytes + 2 * N * itemsize            # tiles + pe
    vmem_limit = int(min(max(32 * 1024 * 1024, working_set + (4 << 20)),
                         56 * 1024 * 1024))

    kernel = functools.partial(_add_pe_dropout_kernel, scale=1.0 / (1.0 - p))

    out2 = pl.pallas_call(
        kernel,
        out_shape=jax.ShapeDtypeStruct((B, N), x.dtype),
        grid=grid,
        in_specs=[
            pl.BlockSpec((tb, N), lambda i: (i, 0)),     # x rows
            pl.BlockSpec((1, N), lambda i: (0, 0)),      # pe (resident)
            pl.BlockSpec((tb, N), lambda i: (i, 0)),     # keep mask rows
        ],
        out_specs=pl.BlockSpec((tb, N), lambda i: (i, 0)),
        compiler_params=pltpu.CompilerParams(
            dimension_semantics=("parallel",),           # shard across TCs (v7x)
            vmem_limit_bytes=vmem_limit),
    )(x2, pe2, keep)

    return out2.reshape(B, S, E)


# -----------------------------------------------------------------------------
# Demo / smoke test
# -----------------------------------------------------------------------------
if __name__ == "__main__":
    batch, pad_size, embed = 2, 8, 32
    dropout_p = 0.1

    root = jax.random.PRNGKey(0)
    kx, kd = jax.random.split(root)
    x = jax.random.normal(kx, (batch, pad_size, embed), dtype=jnp.float32)
    pe = make_positional_encoding_table(embed, pad_size)

    # Training mode (dropout active, deterministic via wrapper-side mask).
    out_train = positional_encoding_forward(
        x, pe, dropout_p=dropout_p, training=True, rng_key=kd)
    out_train = jax.block_until_ready(out_train)

    # Eval mode (dropout is identity).
    out_eval = positional_encoding_forward(
        x, pe, dropout_p=dropout_p, training=False)
    out_eval = jax.block_until_ready(out_eval)

    ref = x + pe[None]
    assert out_train.shape == (batch, pad_size, embed)
    assert jnp.allclose(out_eval, ref, atol=1e-6), "eval-mode mismatch"

    # Dropped entries are exactly zero; kept entries are ref / (1 - p).
    kept = out_train != 0.0
    assert jnp.allclose(
        jnp.where(kept, out_train, 0.0),
        jnp.where(kept, ref / (1.0 - dropout_p), 0.0),
        atol=1e-5,
    ), "train-mode dropout scaling mismatch"

    print("KERNEL_OK")
</pallas_src>

<mosaic_0001>
module attributes {stable_mosaic.version = 11 : i64} {
  func.func @_add_pe_dropout_kernel(%arg0: i32, %arg1: memref<2x256xf32, #tpu.memory_space<vmem>>, %arg2: memref<1x256xf32, #tpu.memory_space<vmem>>, %arg3: memref<2x256xi8, #tpu.memory_space<vmem>>, %arg4: memref<2x256xf32, #tpu.memory_space<vmem>>) attributes {dimension_semantics = [#tpu.dimension_semantics<parallel>], iteration_bounds = array<i64: 1>, scalar_prefetch = 0 : i64, scratch_operands = 0 : i64, tpu.core_type = #tpu.core_type<tc>, window_params = [{transform_indices = @transform_0, window_bounds = array<i64: 2, 256>}, {pipeline_mode = #tpu.pipeline_mode<synchronous>, transform_indices = @transform_1, window_bounds = array<i64: 1, 256>}, {transform_indices = @transform_2, window_bounds = array<i64: 2, 256>}, {transform_indices = @transform_3, window_bounds = array<i64: 2, 256>}]} {
    %c0 = arith.constant 0 : index
    %c0_0 = arith.constant 0 : index
    %0 = vector.load %arg1[%c0, %c0_0] : memref<2x256xf32, #tpu.memory_space<vmem>>, vector<2x256xf32>
    %c0_1 = arith.constant 0 : index
    %c0_2 = arith.constant 0 : index
    %1 = vector.load %arg3[%c0_1, %c0_2] : memref<2x256xi8, #tpu.memory_space<vmem>>, vector<2x256xi8>
    %2 = arith.uitofp %1 : vector<2x256xi8> to vector<2x256xf32>
    %c0_3 = arith.constant 0 : index
    %c0_4 = arith.constant 0 : index
    %3 = vector.load %arg2[%c0_3, %c0_4] : memref<1x256xf32, #tpu.memory_space<vmem>>, vector<1x256xf32>
    %4 = vector.broadcast %3 : vector<1x256xf32> to vector<2x256xf32>
    %5 = arith.addf %0, %4 : vector<2x256xf32>
    %6 = arith.mulf %5, %2 : vector<2x256xf32>
    %cst = arith.constant 1.11111116 : f32
    %7 = vector.broadcast %cst : f32 to vector<2x256xf32>
    %8 = arith.mulf %6, %7 : vector<2x256xf32>
    %c0_5 = arith.constant 0 : index
    %c0_6 = arith.constant 0 : index
    %9 = vector.load %arg4[%c0_5, %c0_6] : memref<2x256xf32, #tpu.memory_space<vmem>>, vector<2x256xf32>
    tpu.vector_store %arg4[%c0_5, %c0_6], %8 {strides = array<i32>} : memref<2x256xf32, #tpu.memory_space<vmem>>, vector<2x256xf32>,
    return
  }
  func.func @transform_0(%arg0: i32) -> (i32, i32) {
    %c0_i32 = arith.constant 0 : i32
    %c0_i32_0 = arith.constant 0 : i32
    return %arg0, %c0_i32 : i32, i32
  }
  func.func @transform_1(%arg0: i32) -> (i32, i32) {
    %c0_i32 = arith.constant 0 : i32
    %c0_i32_0 = arith.constant 0 : i32
    %c0_i32_1 = arith.constant 0 : i32
    return %c0_i32, %c0_i32_0 : i32, i32
  }
  func.func @transform_2(%arg0: i32) -> (i32, i32) {
    %c0_i32 = arith.constant 0 : i32
    %c0_i32_0 = arith.constant 0 : i32
    return %arg0, %c0_i32 : i32, i32
  }
  func.func @transform_3(%arg0: i32) -> (i32, i32) {
    %c0_i32 = arith.constant 0 : i32
    %c0_i32_0 = arith.constant 0 : i32
    return %arg0, %c0_i32 : i32, i32
  }
}

</mosaic_0001>

<bundles_post_ra>
// kernel: tpu_custom_call.1
= control target key start
LH: loop header
LB: loop body
LE: loop exit
PB: predicated region body
PF: predicated region fallthrough
CT: control target
= control target key end

     0   :  { %8 = vsyncpa [#allocation3], 0  ;;  %s198_s0 = inlined_call_operand.hbm [shape: f32[2,256], index: 0, kind: input, shape index: {}]   ;;  %s199_s1 = inlined_call_operand.hbm [shape: f32[1,256], index: 1, kind: input, shape index: {}]   ;;  %s200_s2 = inlined_call_operand.vmem [shape: u8[2,256], index: 2, kind: input, shape index: {}]   ;;  %s201_s3 = inlined_call_operand.hbm [shape: f32[2,256], index: 3, kind: output, shape index: {}]  }
   0x1   :  { %9 = vsyncpa [#allocation6], 0 }
   0x2   :  { %10 = vsyncpa [#allocation4], 0  ;;  %s162_s12 = smov [#allocation2]   ;;  %s163_s14 = smov [#allocation5]  }
   0x3   :  { %s17_s13 = sshll.u32 %s162_s12, 4  ;;  %s27_s15 = sshll.u32 %s163_s14, 4  ;;  %s18_s13 = int_to_ptr.vmem [resolvable:$true] %s17_s13  ;;  %s28_s15 = int_to_ptr.vmem [resolvable:$true] %s27_s15 }
   0x4   :  { %s104_s16 = scalar_lea.vmem %s18_s13, 64  ;;  %p109_p1 = scmp.lt.s32.totalorder %s18_s13, %s18_s13 }
   0x5   :  { %p105_p0 = scmp.ne.s32.totalorder %s18_s13, %s104_s16  ;;  %p110_p2 = scmp.lt.s32.totalorder %s104_s16, %s104_s16 }
   0x7   :  { %p111_p3 = por %p110_p2, %p109_p1 }
   0x9   :  { %p112_p4 = pnand %p111_p3, %p105_p0 }
   0xb   :  { %115 = shalt.err (!%p112_p4)
}
   0xc   :  { %20 = dma.hbm_to_vmem [thread:$0]  %s198_s0, 64, %s18_s13, [#allocation3]  }
   0xd   :  { %s124_s19 = scalar_lea.vmem %s28_s15, 32  ;;  %p129_p6 = scmp.lt.s32.totalorder %s28_s15, %s28_s15 }
   0xe   :  { %p125_p5 = scmp.ne.s32.totalorder %s28_s15, %s124_s19  ;;  %p130_p7 = scmp.lt.s32.totalorder %s124_s19, %s124_s19 }
  0x10   :  { %p131_p8 = por %p130_p7, %p129_p6 }
  0x12   :  { %p132_p9 = pnand %p131_p8, %p125_p5 }
  0x14   :  { %135 = shalt.err (!%p132_p9)
}
  0x15   :  { %30 = dma.hbm_to_vmem [thread:$0]  %s199_s1, 32, %s28_s15, [#allocation6]  }
  0x16   :  { %156 = dma.done.wait [#allocation3], 64  }
  0x17   :  { %157 = vsyncadd [#allocation3], 4294967232 }
  0x18   :  { %158 = dma.done.wait [#allocation6], 32  }
  0x19   :  { %159 = vsyncadd [#allocation6], 4294967264  ;;  %v46_v0 = vlaneseq  ;;  %v164_v1 = vmov 1983009808   ;;  %v40_v7 = vld [vmem:[%s200_s2] sm:$0x3] }
  0x1a   :  { %v56_v2 = vunpack.c.l.s4 %v164_v1  ;;  %v44_v8 = vld [vmem:[#allocation5] sm:$0x3]  ;;  %v41_v9 = vunpack.c.0.s8 %v40_v7  ;;  %v39_v15 = vld [vmem:[#allocation2] sm:$0xf]  ;;  %s165_s1 = smov [#allocation7]  }
  0x1b   :  { %v47_v3 = vshrl.u32 %v46_v0, 7  ;;  %s82_s23 = sshll.u32 %s165_s1, 4  ;;  %s83_s23 = int_to_ptr.vmem [resolvable:$true] %s82_s23 }
  0x1c   :  { %v57_v6 = vunpack.c.0.s8 %v56_v2  ;;  %v42_v13 = vand.u32 255, %v41_v9  ;;  %s136_s24 = scalar_lea.vmem %s83_s23, 64  ;;  %p141_p11 = scmp.lt.s32.totalorder %s83_s23, %s83_s23 }
  0x1d   :  { %v48_v4 = vsub.s32 0, %v47_v3  ;;  %v52_v5 = vsub.s32 1, %v47_v3  ;;  %p137_p10 = scmp.ne.s32.totalorder %s83_s23, %s136_s24  ;;  %p142_p12 = scmp.lt.s32.totalorder %s136_s24, %s136_s24 }
  0x1e   :  { %v60_v12 = vsub.s32 %v57_v6, %v47_v3  ;;  %v43_v16 = vcvt.s32.f32 %v42_v13 }
  0x1f   :  { %v49_v10 = vrot.slane %v44_v8, %v48_v4  ;;  %v53_v11 = vrot.slane %v44_v8, %v52_v5  ;;  %p143_p13 = por %p142_p12, %p141_p11 }
  0x20   :  { %v71_v19 = vrot.slane %v43_v16, %v60_v12 }
  0x21   :  { %v54_v14 = vcombine.low %v49_v10, %v53_v11  ;;  %p144_p0 = pnand %p143_p13, %p137_p10 }
  0x23   :  { %v61_v17 = vrot.slane %v54_v14, %v60_v12 }
  0x25   :  { %v63_v18 = vadd.f32 %v61_v17, %v39_v15 }
  0x27   :  { %v73_v20 = vmul.f32 %v71_v19, %v63_v18 }
  0x29   :  { %v74_v21 = vmul.f32 1.1111112, %v73_v20 }
  0x2b   :  { %75 = vst [vmem:[#allocation7] sm:$0xf] %v74_v21 }
  0x2c   :  { %147 = shalt.err (!%p144_p0)
}
  0x2d   :  { %85 = dma.vmem_to_hbm [thread:$0]  %s83_s23, 64, %s201_s3, [#allocation4]  }
  0x2e   :  { %160 = dma.done.wait [#allocation4], 64  }
  0x2f   :  { %161 = vsyncadd [#allocation4], 4294967232 }
  0x30   :  { %89 = vsyncpa [#allocation3], 1 }
  0x31   :  { %90 = vsyncpa [#allocation6], 1 }
  0x32   :  { %91 = vsyncpa [#allocation4], 1 }

</bundles_post_ra>
